<compile_context>
chip_gen: v5e
topology: v5e:2x2
jax: 0.10.0
libtpu: 0.0.40
codegen_flags: <defaults>
</compile_context>

<pallas_src>
import functools

import jax
import jax.numpy as jnp
from jax.experimental import pallas as pl
from jax.experimental.pallas import tpu as pltpu


@functools.lru_cache(maxsize=None)
def _pltpu_roll_is_np_roll():
    """One-time probe of pltpu.roll direction (np.roll convention => out[i] = x[i - shift])."""
    def probe_kernel(x_ref, o_ref):
        o_ref[...] = pltpu.roll(x_ref[...], shift=1, axis=1)

    n = 256
    x = jnp.tile(jnp.arange(n, dtype=jnp.float32)[None, :], (8, 1))
    y = pl.pallas_call(
        probe_kernel, out_shape=jax.ShapeDtypeStruct((8, n), jnp.float32)
    )(x)
    first = int(jax.device_get(y)[0, 0])
    if first == n - 1:
        return True          # np.roll convention
    if first == 1:
        return False         # opposite convention
    raise RuntimeError(f"unexpected pltpu.roll convention (probe value {first})")


def _pos_weight_kernel(rel_ref, mask_ref, w1_ref, b1_ref, w2_ref, b2_ref, o_ref):
    """Position-only attention weights.

    rel_ref  : (2, R, N) f32 VMEM  -- (dy, dx) of each neighbour of each pixel
    mask_ref : (R, N)    f32 VMEM  -- 1.0 where the neighbour lies inside the image
    w1/b1/w2/b2 : position-network params in SMEM (PyTorch (out, in) layout)
    o_ref    : (C, R, N) f32       -- masked per-channel softmax weights
    """
    num_ch = o_ref.shape[0]
    rel_y = rel_ref[0]                     # (R, N)
    rel_x = rel_ref[1]                     # (R, N)
    mask = mask_ref[...]                   # (R, N)

    # Linear(2, C) + ReLU as scalar*vector MACs on the VPU (C is tiny here).
    # TODO(synk): for large C this channel mixing should be an MXU matmul instead.
    hidden = [
        jnp.maximum(w1_ref[c, 0] * rel_y + w1_ref[c, 1] * rel_x + b1_ref[c], 0.0)
        for c in range(num_ch)
    ]
    # Linear(C, C), softmax over the neighbourhood axis, OOB mask folded into the weights.
    for co in range(num_ch):
        p = hidden[0] * w2_ref[co, 0]
        for ci in range(1, num_ch):
            p = p + hidden[ci] * w2_ref[co, ci]
        p = p + b2_ref[co]                              # (R, N) logits
        m = jnp.max(p, axis=0, keepdims=True)           # (1, N)
        e = jnp.exp(p - m)
        denom = jnp.sum(e, axis=0, keepdims=True)       # (1, N)
        o_ref[co] = (e / denom) * mask                  # (R, N)


def position_only_att(x, w1, b1, w2, b2, ksize):
    """x: (B, C, H, W).  w1:(C,2), b1:(C,), w2:(C,C), b2:(C,) in PyTorch Linear layout."""
    B, C, H, W = x.shape
    N = H * W
    R = ksize * ksize
    pad_lo = (ksize - 1) // 2
    pad_hi = (ksize - 1) - pad_lo

    # ---- position-only setup: relative coords, in-bounds mask, flat neighbour offsets ----
    # (O(R*N) floats of pure index arithmetic; not on the activation data path.)
    coords = jnp.stack(
        jnp.meshgrid(jnp.linspace(-3.0, 3.0, H), jnp.linspace(-3.0, 3.0, W),
                     indexing="ij"),
        axis=-1,
    ).astype(jnp.float32)                                               # (H, W, 2)
    coords_pad = jnp.pad(coords, ((pad_lo, pad_hi), (pad_lo, pad_hi), (0, 0)))
    rows = jnp.arange(H)
    cols = jnp.arange(W)
    rel_list, mask_list, offs = [], [], []
    for dy in range(ksize):
        for dx in range(ksize):
            ry, rx = dy - pad_lo, dx - pad_lo
            rel_list.append(coords_pad[dy:dy + H, dx:dx + W, :] - coords)
            row_ok = (rows + ry >= 0) & (rows + ry < H)
            col_ok = (cols + rx >= 0) & (cols + rx < W)
            mask_list.append((row_ok[:, None] & col_ok[None, :]).astype(jnp.float32))
            offs.append(ry * W + rx)
    rel = jnp.transpose(jnp.stack(rel_list, axis=0).reshape(R, N, 2), (2, 0, 1))   # (2, R, N)
    mask = jnp.stack(mask_list, axis=0).reshape(R, N)                               # (R, N)

    # ---- pass 1: per-channel, per-pixel neighbourhood softmax weights (C, R, N) ----
    w_eff = pl.pallas_call(
        _pos_weight_kernel,
        out_shape=jax.ShapeDtypeStruct((C, R, N), jnp.float32),
        in_specs=[
            pl.BlockSpec(memory_space=pltpu.MemorySpace.VMEM),   # rel
            pl.BlockSpec(memory_space=pltpu.MemorySpace.VMEM),   # mask
            pl.BlockSpec(memory_space=pltpu.MemorySpace.SMEM),   # w1
            pl.BlockSpec(memory_space=pltpu.MemorySpace.SMEM),   # b1
            pl.BlockSpec(memory_space=pltpu.MemorySpace.SMEM),   # w2
            pl.BlockSpec(memory_space=pltpu.MemorySpace.SMEM),   # b2
        ],
        out_specs=pl.BlockSpec(memory_space=pltpu.MemorySpace.VMEM),
    )(rel, mask,
      w1.astype(jnp.float32), b1.astype(jnp.float32),
      w2.astype(jnp.float32), b2.astype(jnp.float32))

    # ---- pass 2: apply the weights to x, streaming one batch sample per grid step ----
    roll_is_np = _pltpu_roll_is_np_roll()
    shifts = [((-off) % N) if roll_is_np else (off % N) for off in offs]

    x3 = x.reshape(B, C, N)   # NCHW kept; (H, W) flattened -> lane-dense last dim (no transpose)

    def _apply_kernel(w_ref, x_ref, o_ref):
        xb = x_ref[0].astype(jnp.float32)                    # (C, N)
        acc = jnp.zeros((C, N), dtype=jnp.float32)
        for j, s in enumerate(shifts):                       # static unroll over R neighbours
            nbr = xb if s == 0 else pltpu.roll(xb, shift=s, axis=1)
            acc = acc + w_ref[:, j, :] * nbr                 # masked weights zero OOB/wrap terms
        o_ref[0] = acc.astype(o_ref.dtype)

    out3 = pl.pallas_call(
        _apply_kernel,
        out_shape=jax.ShapeDtypeStruct((B, C, N), x.dtype),
        grid_spec=pltpu.PrefetchScalarGridSpec(
            num_scalar_prefetch=0,
            grid=(B,),
            in_specs=[
                pl.BlockSpec((C, R, N), lambda b: (0, 0, 0)),   # weights held resident
                pl.BlockSpec((1, C, N), lambda b: (b, 0, 0)),   # per-batch x tile
            ],
            out_specs=pl.BlockSpec((1, C, N), lambda b: (b, 0, 0)),
        ),
        compiler_params=pltpu.CompilerParams(
            dimension_semantics=("parallel",),                  # batch items independent (v7x 2-TC)
            vmem_limit_bytes=32 * 1024 * 1024,
        ),
    )(w_eff, x3)

    # TODO(synk): for large H*W, tile the pixel axis with a ksize-wide halo instead of
    # keeping whole (C, N) rows resident per grid step.
    return out3.reshape(B, C, H, W)


def _reference(x, w1, b1, w2, b2, ksize):
    """Pure-JAX reference of the same position-only neighbourhood attention."""
    B, C, H, W = x.shape
    pad_lo = (ksize - 1) // 2
    pad_hi = (ksize - 1) - pad_lo
    coords = jnp.stack(
        jnp.meshgrid(jnp.linspace(-3.0, 3.0, H), jnp.linspace(-3.0, 3.0, W),
                     indexing="ij"),
        axis=-1,
    ).astype(jnp.float32)                                     # (H, W, 2)
    coords_pad = jnp.pad(coords, ((pad_lo, pad_hi), (pad_lo, pad_hi), (0, 0)))
    x_pad = jnp.pad(x.astype(jnp.float32),
                    ((0, 0), (0, 0), (pad_lo, pad_hi), (pad_lo, pad_hi)))
    nbrs, vals = [], []
    for dy in range(ksize):
        for dx in range(ksize):
            nbrs.append(coords_pad[dy:dy + H, dx:dx + W, :])
            vals.append(x_pad[:, :, dy:dy + H, dx:dx + W])
    nbr = jnp.stack(nbrs, axis=0)                             # (R, H, W, 2)
    val = jnp.stack(vals, axis=0)                             # (R, B, C, H, W)
    rel = nbr - coords[None]                                  # (R, H, W, 2)
    hidden = jax.nn.relu(jnp.einsum("rhwi,ci->rhwc", rel, w1) + b1)
    logits = jnp.einsum("rhwc,oc->rhwo", hidden, w2) + b2     # (R, H, W, C)
    wgt = jax.nn.softmax(logits, axis=0)                      # softmax over the neighbourhood
    return jnp.einsum("rhwc,rbchw->bchw", wgt, val)


if __name__ == "__main__":
    key = jax.random.PRNGKey(0)
    kx, k1, k2, k3, k4 = jax.random.split(key, 5)

    B, C, H, W = 2, 4, 16, 16
    KSIZE = 3

    x = jax.random.normal(kx, (B, C, H, W), dtype=jnp.float32)
    # position_network = Linear(2, C) -> ReLU -> Linear(C, C)   (PyTorch (out, in) layout)
    w1 = jax.random.normal(k1, (C, 2), dtype=jnp.float32) / jnp.sqrt(2.0)
    b1 = 0.1 * jax.random.normal(k2, (C,), dtype=jnp.float32)
    w2 = jax.random.normal(k3, (C, C), dtype=jnp.float32) / jnp.sqrt(1.0 * C)
    b2 = 0.1 * jax.random.normal(k4, (C,), dtype=jnp.float32)

    out = position_only_att(x, w1, b1, w2, b2, KSIZE)
    out = jax.block_until_ready(out)

    ref = _reference(x, w1, b1, w2, b2, KSIZE)
    assert out.shape == (B, C, H, W)
    assert jnp.allclose(out, ref, atol=1e-4, rtol=1e-4), "mismatch vs pure-JAX reference"

    print("KERNEL_OK")
</pallas_src>

<mosaic_0001>
module attributes {stable_mosaic.version = 11 : i64} {
  func.func @_pos_weight_kernel(%arg0: memref<2x9x256xf32, #tpu.memory_space<vmem>>, %arg1: memref<9x256xf32, #tpu.memory_space<vmem>>, %arg2: memref<4x2xf32, #tpu.memory_space<smem>>, %arg3: memref<4xf32, #tpu.memory_space<smem>>, %arg4: memref<4x4xf32, #tpu.memory_space<smem>>, %arg5: memref<4xf32, #tpu.memory_space<smem>>, %arg6: memref<4x9x256xf32, #tpu.memory_space<vmem>>) attributes {dimension_semantics = [], scalar_prefetch = 0 : i64, scratch_operands = 0 : i64, tpu.core_type = #tpu.core_type<tc>} {
    %c0 = arith.constant 0 : index
    %c0_0 = arith.constant 0 : index
    %c0_1 = arith.constant 0 : index
    %0 = vector.load %arg0[%c0, %c0_0, %c0_1] : memref<2x9x256xf32, #tpu.memory_space<vmem>>, vector<1x9x256xf32>
    %1 = vector.shape_cast %0 : vector<1x9x256xf32> to vector<9x256xf32>
    %c1 = arith.constant 1 : index
    %c0_2 = arith.constant 0 : index
    %c0_3 = arith.constant 0 : index
    %2 = vector.load %arg0[%c1, %c0_2, %c0_3] : memref<2x9x256xf32, #tpu.memory_space<vmem>>, vector<1x9x256xf32>
    %3 = vector.shape_cast %2 : vector<1x9x256xf32> to vector<9x256xf32>
    %c0_4 = arith.constant 0 : index
    %c0_5 = arith.constant 0 : index
    %4 = vector.load %arg1[%c0_4, %c0_5] : memref<9x256xf32, #tpu.memory_space<vmem>>, vector<9x256xf32>
    %c0_6 = arith.constant 0 : index
    %c0_7 = arith.constant 0 : index
    %5 = memref.load %arg2[%c0_6, %c0_7] : memref<4x2xf32, #tpu.memory_space<smem>>
    %6 = vector.broadcast %5 : f32 to vector<9x256xf32>
    %7 = arith.mulf %6, %1 : vector<9x256xf32>
    %c0_8 = arith.constant 0 : index
    %c1_9 = arith.constant 1 : index
    %8 = memref.load %arg2[%c0_8, %c1_9] : memref<4x2xf32, #tpu.memory_space<smem>>
    %9 = vector.broadcast %8 : f32 to vector<9x256xf32>
    %10 = arith.mulf %9, %3 : vector<9x256xf32>
    %11 = arith.addf %7, %10 : vector<9x256xf32>
    %c0_10 = arith.constant 0 : index
    %12 = memref.load %arg3[%c0_10] : memref<4xf32, #tpu.memory_space<smem>>
    %13 = vector.broadcast %12 : f32 to vector<9x256xf32>
    %14 = arith.addf %11, %13 : vector<9x256xf32>
    %cst = arith.constant 0.000000e+00 : f32
    %15 = vector.broadcast %cst : f32 to vector<9x256xf32>
    %16 = arith.maximumf %14, %15 : vector<9x256xf32>
    %c1_11 = arith.constant 1 : index
    %c0_12 = arith.constant 0 : index
    %17 = memref.load %arg2[%c1_11, %c0_12] : memref<4x2xf32, #tpu.memory_space<smem>>
    %18 = vector.broadcast %17 : f32 to vector<9x256xf32>
    %19 = arith.mulf %18, %1 : vector<9x256xf32>
    %c1_13 = arith.constant 1 : index
    %c1_14 = arith.constant 1 : index
    %20 = memref.load %arg2[%c1_13, %c1_14] : memref<4x2xf32, #tpu.memory_space<smem>>
    %21 = vector.broadcast %20 : f32 to vector<9x256xf32>
    %22 = arith.mulf %21, %3 : vector<9x256xf32>
    %23 = arith.addf %19, %22 : vector<9x256xf32>
    %c1_15 = arith.constant 1 : index
    %24 = memref.load %arg3[%c1_15] : memref<4xf32, #tpu.memory_space<smem>>
    %25 = vector.broadcast %24 : f32 to vector<9x256xf32>
    %26 = arith.addf %23, %25 : vector<9x256xf32>
    %cst_16 = arith.constant 0.000000e+00 : f32
    %27 = vector.broadcast %cst_16 : f32 to vector<9x256xf32>
    %28 = arith.maximumf %26, %27 : vector<9x256xf32>
    %c2 = arith.constant 2 : index
    %c0_17 = arith.constant 0 : index
    %29 = memref.load %arg2[%c2, %c0_17] : memref<4x2xf32, #tpu.memory_space<smem>>
    %30 = vector.broadcast %29 : f32 to vector<9x256xf32>
    %31 = arith.mulf %30, %1 : vector<9x256xf32>
    %c2_18 = arith.constant 2 : index
    %c1_19 = arith.constant 1 : index
    %32 = memref.load %arg2[%c2_18, %c1_19] : memref<4x2xf32, #tpu.memory_space<smem>>
    %33 = vector.broadcast %32 : f32 to vector<9x256xf32>
    %34 = arith.mulf %33, %3 : vector<9x256xf32>
    %35 = arith.addf %31, %34 : vector<9x256xf32>
    %c2_20 = arith.constant 2 : index
    %36 = memref.load %arg3[%c2_20] : memref<4xf32, #tpu.memory_space<smem>>
    %37 = vector.broadcast %36 : f32 to vector<9x256xf32>
    %38 = arith.addf %35, %37 : vector<9x256xf32>
    %cst_21 = arith.constant 0.000000e+00 : f32
    %39 = vector.broadcast %cst_21 : f32 to vector<9x256xf32>
    %40 = arith.maximumf %38, %39 : vector<9x256xf32>
    %c3 = arith.constant 3 : index
    %c0_22 = arith.constant 0 : index
    %41 = memref.load %arg2[%c3, %c0_22] : memref<4x2xf32, #tpu.memory_space<smem>>
    %42 = vector.broadcast %41 : f32 to vector<9x256xf32>
    %43 = arith.mulf %42, %1 : vector<9x256xf32>
    %c3_23 = arith.constant 3 : index
    %c1_24 = arith.constant 1 : index
    %44 = memref.load %arg2[%c3_23, %c1_24] : memref<4x2xf32, #tpu.memory_space<smem>>
    %45 = vector.broadcast %44 : f32 to vector<9x256xf32>
    %46 = arith.mulf %45, %3 : vector<9x256xf32>
    %47 = arith.addf %43, %46 : vector<9x256xf32>
    %c3_25 = arith.constant 3 : index
    %48 = memref.load %arg3[%c3_25] : memref<4xf32, #tpu.memory_space<smem>>
    %49 = vector.broadcast %48 : f32 to vector<9x256xf32>
    %50 = arith.addf %47, %49 : vector<9x256xf32>
    %cst_26 = arith.constant 0.000000e+00 : f32
    %51 = vector.broadcast %cst_26 : f32 to vector<9x256xf32>
    %52 = arith.maximumf %50, %51 : vector<9x256xf32>
    %c0_27 = arith.constant 0 : index
    %c0_28 = arith.constant 0 : index
    %53 = memref.load %arg4[%c0_27, %c0_28] : memref<4x4xf32, #tpu.memory_space<smem>>
    %54 = vector.broadcast %53 : f32 to vector<9x256xf32>
    %55 = arith.mulf %16, %54 : vector<9x256xf32>
    %c0_29 = arith.constant 0 : index
    %c1_30 = arith.constant 1 : index
    %56 = memref.load %arg4[%c0_29, %c1_30] : memref<4x4xf32, #tpu.memory_space<smem>>
    %57 = vector.broadcast %56 : f32 to vector<9x256xf32>
    %58 = arith.mulf %28, %57 : vector<9x256xf32>
    %59 = arith.addf %55, %58 : vector<9x256xf32>
    %c0_31 = arith.constant 0 : index
    %c2_32 = arith.constant 2 : index
    %60 = memref.load %arg4[%c0_31, %c2_32] : memref<4x4xf32, #tpu.memory_space<smem>>
    %61 = vector.broadcast %60 : f32 to vector<9x256xf32>
    %62 = arith.mulf %40, %61 : vector<9x256xf32>
    %63 = arith.addf %59, %62 : vector<9x256xf32>
    %c0_33 = arith.constant 0 : index
    %c3_34 = arith.constant 3 : index
    %64 = memref.load %arg4[%c0_33, %c3_34] : memref<4x4xf32, #tpu.memory_space<smem>>
    %65 = vector.broadcast %64 : f32 to vector<9x256xf32>
    %66 = arith.mulf %52, %65 : vector<9x256xf32>
    %67 = arith.addf %63, %66 : vector<9x256xf32>
    %c0_35 = arith.constant 0 : index
    %68 = memref.load %arg5[%c0_35] : memref<4xf32, #tpu.memory_space<smem>>
    %69 = vector.broadcast %68 : f32 to vector<9x256xf32>
    %70 = arith.addf %67, %69 : vector<9x256xf32>
    %cst_36 = arith.constant dense<0xFF800000> : vector<256xf32>
    %71 = vector.multi_reduction <maximumf>, %70, %cst_36 [0] : vector<9x256xf32> to vector<256xf32>
    %72 = vector.shape_cast %71 : vector<256xf32> to vector<1x256xf32>
    %73 = vector.broadcast %72 : vector<1x256xf32> to vector<9x256xf32>
    %74 = arith.subf %70, %73 : vector<9x256xf32>
    %75 = math.exp %74 : vector<9x256xf32>
    %cst_37 = arith.constant dense<0.000000e+00> : vector<256xf32>
    %76 = vector.multi_reduction <add>, %75, %cst_37 [0] : vector<9x256xf32> to vector<256xf32>
    %77 = vector.shape_cast %76 : vector<256xf32> to vector<1x256xf32>
    %78 = vector.broadcast %77 : vector<1x256xf32> to vector<9x256xf32>
    %79 = arith.divf %75, %78 : vector<9x256xf32>
    %80 = arith.mulf %79, %4 : vector<9x256xf32>
    %c0_38 = arith.constant 0 : index
    %c0_39 = arith.constant 0 : index
    %c0_40 = arith.constant 0 : index
    %81 = vector.load %arg6[%c0_38, %c0_39, %c0_40] : memref<4x9x256xf32, #tpu.memory_space<vmem>>, vector<1x9x256xf32>
    %82 = vector.shape_cast %81 : vector<1x9x256xf32> to vector<9x256xf32>
    %83 = vector.shape_cast %80 : vector<9x256xf32> to vector<1x9x256xf32>
    tpu.vector_store %arg6[%c0_38, %c0_39, %c0_40], %83 {strides = array<i32>} : memref<4x9x256xf32, #tpu.memory_space<vmem>>, vector<1x9x256xf32>,
    %c1_41 = arith.constant 1 : index
    %c0_42 = arith.constant 0 : index
    %84 = memref.load %arg4[%c1_41, %c0_42] : memref<4x4xf32, #tpu.memory_space<smem>>
    %85 = vector.broadcast %84 : f32 to vector<9x256xf32>
    %86 = arith.mulf %16, %85 : vector<9x256xf32>
    %c1_43 = arith.constant 1 : index
    %c1_44 = arith.constant 1 : index
    %87 = memref.load %arg4[%c1_43, %c1_44] : memref<4x4xf32, #tpu.memory_space<smem>>
    %88 = vector.broadcast %87 : f32 to vector<9x256xf32>
    %89 = arith.mulf %28, %88 : vector<9x256xf32>
    %90 = arith.addf %86, %89 : vector<9x256xf32>
    %c1_45 = arith.constant 1 : index
    %c2_46 = arith.constant 2 : index
    %91 = memref.load %arg4[%c1_45, %c2_46] : memref<4x4xf32, #tpu.memory_space<smem>>
    %92 = vector.broadcast %91 : f32 to vector<9x256xf32>
    %93 = arith.mulf %40, %92 : vector<9x256xf32>
    %94 = arith.addf %90, %93 : vector<9x256xf32>
    %c1_47 = arith.constant 1 : index
    %c3_48 = arith.constant 3 : index
    %95 = memref.load %arg4[%c1_47, %c3_48] : memref<4x4xf32, #tpu.memory_space<smem>>
    %96 = vector.broadcast %95 : f32 to vector<9x256xf32>
    %97 = arith.mulf %52, %96 : vector<9x256xf32>
    %98 = arith.addf %94, %97 : vector<9x256xf32>
    %c1_49 = arith.constant 1 : index
    %99 = memref.load %arg5[%c1_49] : memref<4xf32, #tpu.memory_space<smem>>
    %100 = vector.broadcast %99 : f32 to vector<9x256xf32>
    %101 = arith.addf %98, %100 : vector<9x256xf32>
    %cst_50 = arith.constant dense<0xFF800000> : vector<256xf32>
    %102 = vector.multi_reduction <maximumf>, %101, %cst_50 [0] : vector<9x256xf32> to vector<256xf32>
    %103 = vector.shape_cast %102 : vector<256xf32> to vector<1x256xf32>
    %104 = vector.broadcast %103 : vector<1x256xf32> to vector<9x256xf32>
    %105 = arith.subf %101, %104 : vector<9x256xf32>
    %106 = math.exp %105 : vector<9x256xf32>
    %cst_51 = arith.constant dense<0.000000e+00> : vector<256xf32>
    %107 = vector.multi_reduction <add>, %106, %cst_51 [0] : vector<9x256xf32> to vector<256xf32>
    %108 = vector.shape_cast %107 : vector<256xf32> to vector<1x256xf32>
    %109 = vector.broadcast %108 : vector<1x256xf32> to vector<9x256xf32>
    %110 = arith.divf %106, %109 : vector<9x256xf32>
    %111 = arith.mulf %110, %4 : vector<9x256xf32>
    %c1_52 = arith.constant 1 : index
    %c0_53 = arith.constant 0 : index
    %c0_54 = arith.constant 0 : index
    %112 = vector.load %arg6[%c1_52, %c0_53, %c0_54] : memref<4x9x256xf32, #tpu.memory_space<vmem>>, vector<1x9x256xf32>
    %113 = vector.shape_cast %112 : vector<1x9x256xf32> to vector<9x256xf32>
    %114 = vector.shape_cast %111 : vector<9x256xf32> to vector<1x9x256xf32>
    tpu.vector_store %arg6[%c1_52, %c0_53, %c0_54], %114 {strides = array<i32>} : memref<4x9x256xf32, #tpu.memory_space<vmem>>, vector<1x9x256xf32>,
    %c2_55 = arith.constant 2 : index
    %c0_56 = arith.constant 0 : index
    %115 = memref.load %arg4[%c2_55, %c0_56] : memref<4x4xf32, #tpu.memory_space<smem>>
    %116 = vector.broadcast %115 : f32 to vector<9x256xf32>
    %117 = arith.mulf %16, %116 : vector<9x256xf32>
    %c2_57 = arith.constant 2 : index
    %c1_58 = arith.constant 1 : index
    %118 = memref.load %arg4[%c2_57, %c1_58] : memref<4x4xf32, #tpu.memory_space<smem>>
    %119 = vector.broadcast %118 : f32 to vector<9x256xf32>
    %120 = arith.mulf %28, %119 : vector<9x256xf32>
    %121 = arith.addf %117, %120 : vector<9x256xf32>
    %c2_59 = arith.constant 2 : index
    %c2_60 = arith.constant 2 : index
    %122 = memref.load %arg4[%c2_59, %c2_60] : memref<4x4xf32, #tpu.memory_space<smem>>
    %123 = vector.broadcast %122 : f32 to vector<9x256xf32>
    %124 = arith.mulf %40, %123 : vector<9x256xf32>
    %125 = arith.addf %121, %124 : vector<9x256xf32>
    %c2_61 = arith.constant 2 : index
    %c3_62 = arith.constant 3 : index
    %126 = memref.load %arg4[%c2_61, %c3_62] : memref<4x4xf32, #tpu.memory_space<smem>>
    %127 = vector.broadcast %126 : f32 to vector<9x256xf32>
    %128 = arith.mulf %52, %127 : vector<9x256xf32>
    %129 = arith.addf %125, %128 : vector<9x256xf32>
    %c2_63 = arith.constant 2 : index
    %130 = memref.load %arg5[%c2_63] : memref<4xf32, #tpu.memory_space<smem>>
    %131 = vector.broadcast %130 : f32 to vector<9x256xf32>
    %132 = arith.addf %129, %131 : vector<9x256xf32>
    %cst_64 = arith.constant dense<0xFF800000> : vector<256xf32>
    %133 = vector.multi_reduction <maximumf>, %132, %cst_64 [0] : vector<9x256xf32> to vector<256xf32>
    %134 = vector.shape_cast %133 : vector<256xf32> to vector<1x256xf32>
    %135 = vector.broadcast %134 : vector<1x256xf32> to vector<9x256xf32>
    %136 = arith.subf %132, %135 : vector<9x256xf32>
    %137 = math.exp %136 : vector<9x256xf32>
    %cst_65 = arith.constant dense<0.000000e+00> : vector<256xf32>
    %138 = vector.multi_reduction <add>, %137, %cst_65 [0] : vector<9x256xf32> to vector<256xf32>
    %139 = vector.shape_cast %138 : vector<256xf32> to vector<1x256xf32>
    %140 = vector.broadcast %139 : vector<1x256xf32> to vector<9x256xf32>
    %141 = arith.divf %137, %140 : vector<9x256xf32>
    %142 = arith.mulf %141, %4 : vector<9x256xf32>
    %c2_66 = arith.constant 2 : index
    %c0_67 = arith.constant 0 : index
    %c0_68 = arith.constant 0 : index
    %143 = vector.load %arg6[%c2_66, %c0_67, %c0_68] : memref<4x9x256xf32, #tpu.memory_space<vmem>>, vector<1x9x256xf32>
    %144 = vector.shape_cast %143 : vector<1x9x256xf32> to vector<9x256xf32>
    %145 = vector.shape_cast %142 : vector<9x256xf32> to vector<1x9x256xf32>
    tpu.vector_store %arg6[%c2_66, %c0_67, %c0_68], %145 {strides = array<i32>} : memref<4x9x256xf32, #tpu.memory_space<vmem>>, vector<1x9x256xf32>,
    %c3_69 = arith.constant 3 : index
    %c0_70 = arith.constant 0 : index
    %146 = memref.load %arg4[%c3_69, %c0_70] : memref<4x4xf32, #tpu.memory_space<smem>>
    %147 = vector.broadcast %146 : f32 to vector<9x256xf32>
    %148 = arith.mulf %16, %147 : vector<9x256xf32>
    %c3_71 = arith.constant 3 : index
    %c1_72 = arith.constant 1 : index
    %149 = memref.load %arg4[%c3_71, %c1_72] : memref<4x4xf32, #tpu.memory_space<smem>>
    %150 = vector.broadcast %149 : f32 to vector<9x256xf32>
    %151 = arith.mulf %28, %150 : vector<9x256xf32>
    %152 = arith.addf %148, %151 : vector<9x256xf32>
    %c3_73 = arith.constant 3 : index
    %c2_74 = arith.constant 2 : index
    %153 = memref.load %arg4[%c3_73, %c2_74] : memref<4x4xf32, #tpu.memory_space<smem>>
    %154 = vector.broadcast %153 : f32 to vector<9x256xf32>
    %155 = arith.mulf %40, %154 : vector<9x256xf32>
    %156 = arith.addf %152, %155 : vector<9x256xf32>
    %c3_75 = arith.constant 3 : index
    %c3_76 = arith.constant 3 : index
    %157 = memref.load %arg4[%c3_75, %c3_76] : memref<4x4xf32, #tpu.memory_space<smem>>
    %158 = vector.broadcast %157 : f32 to vector<9x256xf32>
    %159 = arith.mulf %52, %158 : vector<9x256xf32>
    %160 = arith.addf %156, %159 : vector<9x256xf32>
    %c3_77 = arith.constant 3 : index
    %161 = memref.load %arg5[%c3_77] : memref<4xf32, #tpu.memory_space<smem>>
    %162 = vector.broadcast %161 : f32 to vector<9x256xf32>
    %163 = arith.addf %160, %162 : vector<9x256xf32>
    %cst_78 = arith.constant dense<0xFF800000> : vector<256xf32>
    %164 = vector.multi_reduction <maximumf>, %163, %cst_78 [0] : vector<9x256xf32> to vector<256xf32>
    %165 = vector.shape_cast %164 : vector<256xf32> to vector<1x256xf32>
    %166 = vector.broadcast %165 : vector<1x256xf32> to vector<9x256xf32>
    %167 = arith.subf %163, %166 : vector<9x256xf32>
    %168 = math.exp %167 : vector<9x256xf32>
    %cst_79 = arith.constant dense<0.000000e+00> : vector<256xf32>
    %169 = vector.multi_reduction <add>, %168, %cst_79 [0] : vector<9x256xf32> to vector<256xf32>
    %170 = vector.shape_cast %169 : vector<256xf32> to vector<1x256xf32>
    %171 = vector.broadcast %170 : vector<1x256xf32> to vector<9x256xf32>
    %172 = arith.divf %168, %171 : vector<9x256xf32>
    %173 = arith.mulf %172, %4 : vector<9x256xf32>
    %c3_80 = arith.constant 3 : index
    %c0_81 = arith.constant 0 : index
    %c0_82 = arith.constant 0 : index
    %174 = vector.load %arg6[%c3_80, %c0_81, %c0_82] : memref<4x9x256xf32, #tpu.memory_space<vmem>>, vector<1x9x256xf32>
    %175 = vector.shape_cast %174 : vector<1x9x256xf32> to vector<9x256xf32>
    %176 = vector.shape_cast %173 : vector<9x256xf32> to vector<1x9x256xf32>
    tpu.vector_store %arg6[%c3_80, %c0_81, %c0_82], %176 {strides = array<i32>} : memref<4x9x256xf32, #tpu.memory_space<vmem>>, vector<1x9x256xf32>,
    return
  }
}

</mosaic_0001>

<bundles_post_ra>
// kernel: tpu_custom_call.1
= control target key start
LH: loop header
LB: loop body
LE: loop exit
PB: predicated region body
PF: predicated region fallthrough
CT: control target
= control target key end

     0   :  { %11 = vsyncpa [#allocation3], 0  ;;  %s1548_s0 = inlined_call_operand.vmem [shape: f32[2,9,256], index: 0, kind: input, shape index: {}]   ;;  %s1549_s1 = inlined_call_operand.vmem [shape: f32[9,256], index: 1, kind: input, shape index: {}]   ;;  %s1550_s2 = inlined_call_operand.vmem [shape: f32[4,2], index: 2, kind: input, shape index: {}]   ;;  %s1551_s3 = inlined_call_operand.vmem [shape: f32[4], index: 3, kind: input, shape index: {}]   ;;  %s1552_s4 = inlined_call_operand.vmem [shape: f32[4,4], index: 4, kind: input, shape index: {}]   ;;  %s1553_s5 = inlined_call_operand.vmem [shape: f32[4], index: 5, kind: input, shape index: {}]   ;;  %s1554_s6 = inlined_call_operand.vmem [shape: f32[4,9,256], index: 6, kind: output, shape index: {}]  }
   0x1   :  { %12 = vsyncpa [#allocation5], 0  ;;  %s32_s23 = sshll.u32 %s1551_s3, 4  ;;  %s33_s23 = int_to_ptr.vmem [resolvable:$true] %s32_s23 }
   0x2   :  { %13 = vsyncpa [#allocation8], 0  ;;  %s23_s26 = sshll.u32 %s1550_s2, 4  ;;  %s853_s27 = smov [#allocation4]   ;;  %s24_s26 = int_to_ptr.vmem [resolvable:$true] %s23_s26 }
   0x3   :  { %35 = dma.vmem_to_smem %s33_s23, 16, %s853_s27, [#allocation5]  }
   0x4   :  { %s854_s28 = smov [#allocation2]   ;;  %s41_s7 = sshll.u32 %s1552_s4, 4  ;;  %s42_s7 = int_to_ptr.vmem [resolvable:$true] %s41_s7 }
   0x5   :  { %26 = dma.vmem_to_smem %s24_s26, 64, %s854_s28, [#allocation3]  }
   0x6   :  { %s50_s3 = sshll.u32 %s1553_s5, 4  ;;  %s855_s10 = smov [#allocation6]   ;;  %s51_s3 = int_to_ptr.vmem [resolvable:$true] %s50_s3 }
   0x7   :  { %44 = dma.vmem_to_smem %s42_s7, 64, %s855_s10, [#allocation5]  }
   0x8   :  { %s856_s11 = smov [#allocation7]  }
   0x9   :  { %53 = dma.vmem_to_smem %s51_s3, 16, %s856_s11, [#allocation8]  }
   0xa   :  { %847 = dma.done.wait [#allocation3], 64  }
   0xb   :  { %848 = vsyncadd [#allocation3], 4294967232 }
   0xc   :  { %849 = dma.done.wait [#allocation5], 80  }
   0xd   :  { %850 = vsyncadd [#allocation5], 4294967216 }
   0xe   :  { %851 = dma.done.wait [#allocation8], 16  }
   0xf   :  { %852 = vsyncadd [#allocation8], 4294967280 }
  0x10   :  { %70 = sfence }
  0x11   :  { %s84_s2 = sld [smem:[#allocation2]]  ;;  %v907_v0 = vld [vmem:[%s1548_s0] sm:$0xff]  ;;  %v912_v1 = vld [vmem:[%s1548_s0 + $0x10] sm:$0x1]  ;;  %v922_v3 = vld [vmem:[%s1548_s0 + $0x8] sm:$0xff]  ;;  %vm230_vm0 = vcmask 1040384  }
  0x12   :  { %s707_s12 = sld [smem:[#allocation2 + $0x1]]  ;;  %v917_v2 = vld [vmem:[%s1548_s0 + $0x20] sm:$0xff]  ;;  %v927_v4 = vld [vmem:[%s1548_s0 + $0x30] sm:$0x1]  ;;  %v932_v5 = vld [vmem:[%s1548_s0 + $0x18] sm:$0x1] }
  0x13   :  { %s100_s4 = sld [smem:[#allocation4]]  ;;  %v939_v7 = vld [vmem:[%s1548_s0 + $0x28] sm:$0xff]  ;;  %v944_v8 = vld [vmem:[%s1548_s0 + $0x38] sm:$0x1] }
  0x14   :  { %s708_s5 = sld [smem:[#allocation2 + $0x80]] }
  0x15   :  { %s709_s19 = sld [smem:[#allocation2 + $0x81]] }
  0x16   :  { %s710_s24 = sld [smem:[#allocation4 + $0x1]] }
  0x17   :  { %v85_v6 = vstv %s84_s2  ;;  %s934_s27 = sld [smem:[#allocation2 + $0x100]] }
  0x18   :  { %v86_v9 = vmul.f32 %v85_v6, %v907_v0  ;;  %v88_v10 = vmul.f32 %v85_v6, %v912_v1  ;;  %v91_v11 = vstv %s707_s12  ;;  %s712_s8 = sld [smem:[#allocation2 + $0x101]]  ;;  %v87_v12 = vmul.f32 %v85_v6, %v922_v3 }
  0x19   :  { %v92_v13 = vmul.f32 %v917_v2, %v91_v11  ;;  %v94_v14 = vmul.f32 %v927_v4, %v91_v11  ;;  %s951_s9 = sld [smem:[#allocation4 + $0x2]]  ;;  %v89_v15 = vmul.f32 %v85_v6, %v932_v5  ;;  %v101_v16 = vstv %s100_s4 }
  0x1a   :  { %v954_v17 = vstv %s708_s5  ;;  %s956_s0 = sld [smem:[#allocation2 + $0x180]]  ;;  %v93_v18 = vmul.f32 %v939_v7, %v91_v11  ;;  %v95_v19 = vmul.f32 %v944_v8, %v91_v11 }
  0x1b   :  { %v96_v20 = vadd.f32 %v92_v13, %v86_v9  ;;  %v98_v21 = vadd.f32 %v94_v14, %v88_v10  ;;  %v112_v22 = vmul.f32 %v954_v17, %v907_v0  ;;  %v114_v23 = vmul.f32 %v954_v17, %v912_v1  ;;  %s964_s3 = sld [smem:[#allocation2 + $0x181]] }
  0x1c   :  { %v966_v24 = vstv %s709_s19  ;;  %v968_v25 = vstv %s710_s24  ;;  %s970_s10 = sld [smem:[#allocation4 + $0x3]]  ;;  %v97_v26 = vadd.f32 %v93_v18, %v87_v12  ;;  %v99_v27 = vadd.f32 %v95_v19, %v89_v15 }
  0x1d   :  { %v102_v28 = vadd.f32 %v101_v16, %v96_v20  ;;  %v104_v29 = vadd.f32 %v101_v16, %v98_v21  ;;  %v118_v30 = vmul.f32 %v917_v2, %v966_v24  ;;  %v120_v31 = vmul.f32 %v927_v4, %v966_v24  ;;  %s976_s11 = sld [smem:[#allocation6]] }
  0x1e   :  { %v979_v32 = vstv %s934_s27  ;;  %v981_v33 = vstv %s712_s8  ;;  %s983_s2 = sld [smem:[#allocation6 + $0x1]]  ;;  %v103_v34 = vadd.f32 %v101_v16, %v97_v26  ;;  %v105_v35 = vadd.f32 %v101_v16, %v99_v27 }
  0x1f   :  { %v985_v36 = vmax.f32 %v102_v28, 0.0  ;;  %v987_v37 = vmax.f32 %v104_v29, 0.0  ;;  %v122_v38 = vadd.f32 %v118_v30, %v112_v22  ;;  %v124_v39 = vadd.f32 %v120_v31, %v114_v23  ;;  %s718_s12 = sld [smem:[#allocation6 + $0x2]] }
  0x20   :  { %v138_v40 = vmul.f32 %v979_v32, %v907_v0  ;;  %v140_v41 = vmul.f32 %v979_v32, %v912_v1  ;;  %v144_v42 = vmul.f32 %v917_v2, %v981_v33  ;;  %v146_v43 = vmul.f32 %v927_v4, %v981_v33  ;;  %s997_s4 = sld [smem:[#allocation6 + $0x3]] }
  0x21   :  { %v128_v44 = vadd.f32 %v968_v25, %v122_v38  ;;  %v130_v45 = vadd.f32 %v968_v25, %v124_v39  ;;  %v1002_v46 = vstv %s951_s9  ;;  %v163_v47 = vstv %s956_s0  ;;  %s1005_s13 = sld [smem:[#allocation7]] }
  0x22   :  { %v148_v48 = vadd.f32 %v144_v42, %v138_v40  ;;  %v150_v49 = vadd.f32 %v146_v43, %v140_v41  ;;  %v164_v50 = vmul.f32 %v163_v47, %v907_v0  ;;  %v166_v51 = vmul.f32 %v163_v47, %v912_v1  ;;  %s1082_s14 = sld [smem:[#allocation6 + $0x80]] }
  0x23   :  { %v1009_v52 = vmax.f32 %v128_v44, 0.0  ;;  %v1011_v53 = vmax.f32 %v130_v45, 0.0  ;;  %v169_v54 = vstv %s964_s3  ;;  %v1015_v55 = vstv %s970_s10  ;;  %s1086_s5 = sld [smem:[#allocation6 + $0x81]] }
  0x24   :  { %v154_v56 = vadd.f32 %v1002_v46, %v148_v48  ;;  %v156_v57 = vadd.f32 %v1002_v46, %v150_v49  ;;  %v170_v58 = vmul.f32 %v917_v2, %v169_v54  ;;  %v172_v59 = vmul.f32 %v927_v4, %v169_v54  ;;  %s1096_s15 = sld [smem:[#allocation6 + $0x82]] }
  0x25   :  { %v1022_v60 = vstv %s976_s11  ;;  %v1025_v61 = vstv %s983_s2  ;;  %v1027_v62 = vstv %s718_s12  ;;  %v1029_v63 = vmax.f32 %v103_v34, 0.0  ;;  %s1103_s16 = sld [smem:[#allocation6 + $0x83]] }
  0x26   :  { %v1031_v0 = vmax.f32 %v154_v56, 0.0  ;;  %v1033_v1 = vmax.f32 %v156_v57, 0.0  ;;  %v174_v6 = vadd.f32 %v170_v58, %v164_v50  ;;  %v176_v9 = vadd.f32 %v172_v59, %v166_v51  ;;  %s1111_s17 = sld [smem:[#allocation7 + $0x1]] }
  0x27   :  { %v190_v2 = vmul.f32 %v1022_v60, %v985_v36  ;;  %v192_v4 = vmul.f32 %v1022_v60, %v987_v37  ;;  %v196_v10 = vmul.f32 %v1025_v61, %v1009_v52  ;;  %v198_v11 = vmul.f32 %v1025_v61, %v1011_v53  ;;  %s1153_s18 = sld [smem:[#allocation6 + $0x100]] }
  0x28   :  { %v180_v12 = vadd.f32 %v1015_v55, %v174_v6  ;;  %v182_v13 = vadd.f32 %v1015_v55, %v176_v9  ;;  %v206_v14 = vmul.f32 %v1027_v62, %v1031_v0  ;;  %v208_v15 = vmul.f32 %v1027_v62, %v1033_v1  ;;  %s1162_s19 = sld [smem:[#allocation6 + $0x101]] }
  0x29   :  { %v200_v16 = vadd.f32 %v196_v10, %v190_v2  ;;  %v202_v18 = vadd.f32 %v198_v11, %v192_v4  ;;  %v1050_v19 = vstv %s997_s4  ;;  %v1053_v20 = vstv %s1005_s13  ;;  %s1168_s20 = sld [smem:[#allocation6 + $0x102]] }
  0x2a   :  { %v1055_v21 = vmax.f32 %v180_v12, 0.0  ;;  %v1057_v22 = vmax.f32 %v182_v13, 0.0  ;;  %v1059_v23 = vmax.f32 %v105_v35, 0.0  ;;  %v113_v26 = vmul.f32 %v954_v17, %v922_v3  ;;  %s1174_s21 = sld [smem:[#allocation6 + $0x103]] }
  0x2b   :  { %v210_v27 = vadd.f32 %v206_v14, %v200_v16  ;;  %v212_v28 = vadd.f32 %v208_v15, %v202_v18  ;;  %v115_v29 = vmul.f32 %v954_v17, %v932_v5  ;;  %v119_v30 = vmul.f32 %v939_v7, %v966_v24  ;;  %s1185_s22 = sld [smem:[#allocation7 + $0x2]] }
  0x2c   :  { %v216_v31 = vmul.f32 %v1050_v19, %v1055_v21  ;;  %v218_v34 = vmul.f32 %v1050_v19, %v1057_v22  ;;  %v121_v35 = vmul.f32 %v944_v8, %v966_v24  ;;  %v139_v38 = vmul.f32 %v979_v32, %v922_v3  ;;  %s1227_s23 = sld [smem:[#allocation6 + $0x180]] }
  0x2d   :  { %v123_v39 = vadd.f32 %v119_v30, %v113_v26  ;;  %v141_v40 = vmul.f32 %v979_v32, %v932_v5  ;;  %v145_v17 = vmul.f32 %v939_v7, %v981_v33  ;;  %v147_v41 = vmul.f32 %v944_v8, %v981_v33  ;;  %s1238_s24 = sld [smem:[#allocation6 + $0x181]] }
  0x2e   :  { %v220_v42 = vadd.f32 %v216_v31, %v210_v27  ;;  %v222_v43 = vadd.f32 %v218_v34, %v212_v28  ;;  %v125_v44 = vadd.f32 %v121_v35, %v115_v29  ;;  %v165_v45 = vmul.f32 %v163_v47, %v922_v3  ;;  %s1250_s25 = sld [smem:[#allocation6 + $0x182]] }
  0x2f   :  { %v129_v24 = vadd.f32 %v968_v25, %v123_v39  ;;  %v149_v48 = vadd.f32 %v145_v17, %v139_v38  ;;  %v151_v49 = vadd.f32 %v147_v41, %v141_v40  ;;  %v167_v50 = vmul.f32 %v163_v47, %v932_v5  ;;  %s1294_s26 = sld [smem:[#allocation6 + $0x183]] }
  0x30   :  { %v1089_v32 = vadd.f32 %v1053_v20, %v220_v42  ;;  %v1092_v33 = vadd.f32 %v1053_v20, %v222_v43  ;;  %v131_v51 = vadd.f32 %v968_v25, %v125_v44  ;;  %v171_v3 = vmul.f32 %v939_v7, %v169_v54  ;;  %s1323_s27 = sld [smem:[#allocation7 + $0x3]] }
  0x31   :  { %v1098_v56 = vmax.f32 %v129_v24, 0.0  ;;  %v155_v57 = vadd.f32 %v1002_v46, %v149_v48  ;;  %v157_v5 = vadd.f32 %v1002_v46, %v151_v49  ;;  %v173_v47 = vmul.f32 %v944_v8, %v169_v54 }
  0x32   :  { %v231_v58 = vsel %vm230_vm0, %v1092_v33, -inf  ;;  %v1107_v59 = vmax.f32 %v131_v51, 0.0  ;;  %v175_v25 = vadd.f32 %v171_v3, %v165_v45  ;;  %v191_v7 = vmul.f32 %v1022_v60, %v1029_v63 }
  0x33   :  { %v232_v6 = vmax.f32 %v1089_v32, %v231_v58  ;;  %v1114_v9 = vmax.f32 %v155_v57, 0.0  ;;  %v1116_v46 = vmax.f32 %v157_v5, 0.0  ;;  %v177_v8 = vadd.f32 %v173_v47, %v167_v50 }
  0x34   :  { %v181_v54 = vadd.f32 %v1015_v55, %v175_v25  ;;  %v193_v2 = vmul.f32 %v1022_v60, %v1059_v23  ;;  %v197_v4 = vmul.f32 %v1025_v61, %v1098_v56  ;;  %v199_v10 = vmul.f32 %v1025_v61, %v1107_v59 }
  0x35   :  { %v233_v11 = vrot.slane %v232_v6, 4  ;;  %v183_v12 = vadd.f32 %v1015_v55, %v177_v8  ;;  %v207_v13 = vmul.f32 %v1027_v62, %v1114_v9  ;;  %v209_v14 = vmul.f32 %v1027_v62, %v1116_v46 }
  0x36   :  { %v1130_v15 = vmax.f32 %v181_v54, 0.0  ;;  %v201_v16 = vadd.f32 %v197_v4, %v191_v7  ;;  %v203_v60 = vadd.f32 %v199_v10, %v193_v2  ;;  %v316_v18 = vstv %s1082_s14 }
  0x37   :  { %v234_v26 = vmax.f32 %v232_v6, %v233_v11  ;;  %v1133_v61 = vmax.f32 %v183_v12, 0.0  ;;  %v317_v27 = vmul.f32 %v316_v18, %v985_v36  ;;  %v319_v55 = vmul.f32 %v316_v18, %v987_v37 }
  0x38   :  { %v211_v28 = vadd.f32 %v207_v13, %v201_v16  ;;  %v213_v29 = vadd.f32 %v209_v14, %v203_v60  ;;  %v217_v62 = vmul.f32 %v1050_v19, %v1130_v15  ;;  %v322_v30 = vstv %s1086_s5 }
  0x39   :  { %v235_v31 = vrot.slane %v234_v26, 2  ;;  %v219_v34 = vmul.f32 %v1050_v19, %v1133_v61  ;;  %v323_v35 = vmul.f32 %v322_v30, %v1009_v52  ;;  %v325_v38 = vmul.f32 %v322_v30, %v1011_v53 }
  0x3a   :  { %v221_v39 = vadd.f32 %v217_v62, %v211_v28  ;;  %v332_v40 = vstv %s1096_s15  ;;  %v342_v17 = vstv %s1103_s16  ;;  %v352_v41 = vstv %s1111_s17 }
  0x3b   :  { %v236_v42 = vmax.f32 %v234_v26, %v235_v31  ;;  %v223_v43 = vadd.f32 %v219_v34, %v213_v29  ;;  %v327_v44 = vadd.f32 %v323_v35, %v317_v27  ;;  %v329_v45 = vadd.f32 %v325_v38, %v319_v55 }
  0x3c   :  { %v1148_v24 = vadd.f32 %v1053_v20, %v221_v39  ;;  %v333_v48 = vmul.f32 %v332_v40, %v1031_v0  ;;  %v335_v49 = vmul.f32 %v332_v40, %v1033_v1  ;;  %v343_v19 = vmul.f32 %v342_v17, %v1055_v21 }
  0x3d   :  { %v237_v50 = vrot.slane %v236_v42, 1  ;;  %v1156_v51 = vadd.f32 %v1053_v20, %v223_v43  ;;  %v345_v3 = vmul.f32 %v342_v17, %v1057_v22  ;;  %v318_v57 = vmul.f32 %v316_v18, %v1029_v63 }
  0x3e   :  { %v337_v5 = vadd.f32 %v333_v48, %v327_v44  ;;  %v339_v47 = vadd.f32 %v335_v49, %v329_v45  ;;  %v320_v58 = vmul.f32 %v316_v18, %v1059_v23  ;;  %v324_v25 = vmul.f32 %v322_v30, %v1098_v56 }
  0x3f   :  { %v238_v7 = vmax.f32 %v236_v42, %v237_v50  ;;  %v239_v6 = vsel %vm230_vm0, %v1156_v51, -inf  ;;  %v326_v8 = vmul.f32 %v322_v30, %v1107_v59  ;;  %v334_v20 = vmul.f32 %v332_v40, %v1114_v9 }
  0x40   :  { %v240_v54 = vmax.f32 %v1148_v24, %v239_v6  ;;  %v347_v2 = vadd.f32 %v343_v19, %v337_v5  ;;  %v349_v4 = vadd.f32 %v345_v3, %v339_v47  ;;  %v328_v10 = vadd.f32 %v324_v25, %v318_v57 }
  0x41   :  { %v247_v11 = vsub.f32 %v1089_v32, %v238_v7  ;;  %v249_v12 = vsub.f32 %v1092_v33, %v238_v7  ;;  %v330_v13 = vadd.f32 %v326_v8, %v320_v58  ;;  %v336_v14 = vmul.f32 %v332_v40, %v1116_v46 }
  0x42   :  { %v241_v16 = vrot.slane %v240_v54, 4  ;;  %v1176_v60 = vadd.f32 %v352_v41, %v347_v2  ;;  %v1178_v18 = vadd.f32 %v352_v41, %v349_v4  ;;  %v338_v26 = vadd.f32 %v334_v20, %v328_v10 }
  0x43   :  { %v251_v27 = vmul.f32 1.442695, %v247_v11  ;;  %v255_v55 = vmul.f32 1.442695, %v249_v12  ;;  %v340_v28 = vadd.f32 %v336_v14, %v330_v13  ;;  %v344_v29 = vmul.f32 %v342_v17, %v1130_v15 }
  0x44   :  { %v242_v32 = vmax.f32 %v240_v54, %v241_v16  ;;  %v357_v33 = vsel %vm230_vm0, %v1178_v18, -inf  ;;  %v346_v62 = vmul.f32 %v342_v17, %v1133_v61  ;;  %v443_v30 = vstv %s1153_s18 }
  0x45   :  { %751 = vpow2.f32 %v251_v27  ;;  %v358_v31 = vmax.f32 %v1176_v60, %v357_v33  ;;  %v348_v34 = vadd.f32 %v344_v29, %v338_v26  ;;  %v444_v35 = vmul.f32 %v443_v30, %v985_v36 }
  0x46   :  { %753 = vpow2.f32 %v255_v55  ;;  %v243_v38 = vrot.slane %v242_v32, 2  ;;  %v350_v39 = vadd.f32 %v346_v62, %v340_v28  ;;  %v446_v40 = vmul.f32 %v443_v30, %v987_v37 }
  0x47   :  { %v359_v42 = vrot.slane %v358_v31, 4  ;;  %v1190_v43 = vadd.f32 %v352_v41, %v348_v34  ;;  %v449_v44 = vstv %s1162_s19  ;;  %v459_v17 = vstv %s1168_s20 }
  0x48   :  { %v244_v45 = vmax.f32 %v242_v32, %v243_v38  ;;  %v1194_v48 = vadd.f32 %v352_v41, %v350_v39  ;;  %v450_v49 = vmul.f32 %v449_v44, %v1009_v52  ;;  %v452_v19 = vmul.f32 %v449_v44, %v1011_v53 }
  0x49   :  { %v360_v50 = vmax.f32 %v358_v31, %v359_v42  ;;  %v460_v3 = vmul.f32 %v459_v17, %v1031_v0  ;;  %v462_v57 = vmul.f32 %v459_v17, %v1033_v1  ;;  %v469_v5 = vstv %s1174_s21 }
  0x4a   :  { %v245_v47 = vrot.slane %v244_v45, 1  ;;  %v365_v58 = vsel %vm230_vm0, %v1194_v48, -inf  ;;  %v454_v25 = vadd.f32 %v450_v49, %v444_v35  ;;  %v456_v7 = vadd.f32 %v452_v19, %v446_v40 }
  0x4b   :  { %v1203_v6 = vpop.eup %751  ;;  %v361_v41 = vrot.slane %v360_v50, 2  ;;  %v366_v8 = vmax.f32 %v1190_v43, %v365_v58  ;;  %v470_v20 = vmul.f32 %v469_v5, %v1055_v21  ;;  %v472_v54 = vmul.f32 %v469_v5, %v1057_v22 }
  0x4c   :  { %v1208_v2 = vpop.eup %753  ;;  %v246_v4 = vmax.f32 %v244_v45, %v245_v47  ;;  %v464_v10 = vadd.f32 %v460_v3, %v454_v25  ;;  %v466_v11 = vadd.f32 %v462_v57, %v456_v7  ;;  %v1211_v12 = vstv %s1185_s22 }
  0x4d   :  { %v259_v13 = vsel %vm230_vm0, %v1208_v2, 0.0  ;;  %v362_v14 = vmax.f32 %v360_v50, %v361_v41  ;;  %v367_v16 = vrot.slane %v366_v8, 4  ;;  %v445_v26 = vmul.f32 %v443_v30, %v1029_v63 }
  0x4e   :  { %v260_v27 = vadd.f32 %v1203_v6, %v259_v13  ;;  %v248_v55 = vsub.f32 %v1148_v24, %v246_v4  ;;  %v250_v28 = vsub.f32 %v1156_v51, %v246_v4  ;;  %v474_v29 = vadd.f32 %v470_v20, %v464_v10 }
  0x4f   :  { %v363_v32 = vrot.slane %v362_v14, 1  ;;  %v368_v33 = vmax.f32 %v366_v8, %v367_v16  ;;  %v476_v62 = vadd.f32 %v472_v54, %v466_v11  ;;  %v447_v31 = vmul.f32 %v443_v30, %v1059_v23 }
  0x50   :  { %v261_v34 = vrot.slane %v260_v27, 4  ;;  %v253_v35 = vmul.f32 1.442695, %v248_v55  ;;  %v257_v38 = vmul.f32 1.442695, %v250_v28  ;;  %v1221_v39 = vadd.f32 %v1211_v12, %v474_v29 }
  0x51   :  { %v364_v40 = vmax.f32 %v362_v14, %v363_v32  ;;  %v369_v42 = vrot.slane %v368_v33, 2  ;;  %v1224_v45 = vadd.f32 %v1211_v12, %v476_v62  ;;  %v451_v24 = vmul.f32 %v449_v44, %v1098_v56 }
  0x52   :  { %v262_v51 = vadd.f32 %v261_v34, %v260_v27  ;;  %755 = vpow2.f32 %v253_v35  ;;  %v453_v49 = vmul.f32 %v449_v44, %v1107_v59  ;;  %v461_v30 = vmul.f32 %v459_v17, %v1114_v9 }
  0x53   :  { %757 = vpow2.f32 %v257_v38  ;;  %v373_v19 = vsub.f32 %v1176_v60, %v364_v40  ;;  %v375_v50 = vsub.f32 %v1178_v18, %v364_v40  ;;  %v370_v3 = vmax.f32 %v368_v33, %v369_v42 }
  0x54   :  { %v263_v57 = vrot.slane %v262_v51, 2  ;;  %v484_v47 = vsel %vm230_vm0, %v1224_v45, -inf  ;;  %v455_v58 = vadd.f32 %v451_v24, %v445_v26  ;;  %v457_v25 = vadd.f32 %v453_v49, %v447_v31 }
  0x55   :  { %v377_v7 = vmul.f32 1.442695, %v373_v19  ;;  %v381_v41 = vmul.f32 1.442695, %v375_v50  ;;  %v371_v8 = vrot.slane %v370_v3, 1  ;;  %v485_v20 = vmax.f32 %v1221_v39, %v484_v47 }
  0x56   :  { %v264_v44 = vadd.f32 %v263_v57, %v262_v51  ;;  %v463_v54 = vmul.f32 %v459_v17, %v1116_v46  ;;  %v465_v4 = vadd.f32 %v461_v30, %v455_v58  ;;  %v471_v60 = vmul.f32 %v469_v5, %v1130_v15 }
  0x57   :  { %759 = vpow2.f32 %v377_v7  ;;  %v372_v18 = vmax.f32 %v370_v3, %v371_v8  ;;  %v486_v10 = vrot.slane %v485_v20, 4  ;;  %v473_v11 = vmul.f32 %v469_v5, %v1133_v61 }
  0x58   :  { %v1241_v13 = vpop.eup %755  ;;  %v265_v14 = vrot.slane %v264_v44, 1  ;;  %761 = vpow2.f32 %v381_v41  ;;  %v467_v16 = vadd.f32 %v463_v54, %v457_v25  ;;  %v475_v26 = vadd.f32 %v471_v60, %v465_v4 }
  0x59   :  { %v1243_v27 = vpop.eup %757  ;;  %v374_v17 = vsub.f32 %v1190_v43, %v372_v18  ;;  %v376_v55 = vsub.f32 %v1194_v48, %v372_v18  ;;  %v487_v28 = vmax.f32 %v485_v20, %v486_v10  ;;  %v1248_v29 = vstv %s1227_s23 }
  0x5a   :  { %v1252_v32 = vadd.f32 %v265_v14, %v264_v44  ;;  %v267_v5 = vsel %vm230_vm0, %v1243_v27, 0.0  ;;  %v477_v33 = vadd.f32 %v473_v11, %v467_v16  ;;  %v1259_v43 = vadd.f32 %v1211_v12, %v475_v26 }
  0x5b   :  { %v268_v62 = vadd.f32 %v1241_v13, %v267_v5  ;;  %v379_v31 = vmul.f32 1.442695, %v374_v17  ;;  %v571_v48 = vmul.f32 %v1248_v29, %v985_v36  ;;  %v573_v34 = vmul.f32 %v1248_v29, %v987_v37 }
  0x5c   :  { %763 = vrcp.f32 %v1252_v32  ;;  %vm280_vm1 = vweird.f32 %v1252_v32  ;;  %v284_v38 = vand.u32 2147483647, %v1252_v32  ;;  %v383_v42 = vmul.f32 1.442695, %v376_v55 }
  0x5d   :  { %v1265_v35 = vpop.eup %759  ;;  %v269_v40 = vrot.slane %v268_v62, 4  ;;  %v488_v24 = vrot.slane %v487_v28, 2  ;;  %v286_v49 = vand.u32 2147483648, %v1252_v32  ;;  %765 = vpow2.f32 %v379_v31 }
  0x5e   :  { %v1269_v51 = vpop.eup %761  ;;  %v1273_v36 = vadd.f32 %v1211_v12, %v477_v33  ;;  %v1276_v30 = vstv %s1238_s24  ;;  %767 = vpow2.f32 %v383_v42  ;;  %v1289_v41 = vstv %s1250_s25 }
  0x5f   :  { %v270_v37 = vadd.f32 %v269_v40, %v268_v62  ;;  %v385_v19 = vsel %vm230_vm0, %v1269_v51, 0.0  ;;  %v489_v50 = vmax.f32 %v487_v28, %v488_v24  ;;  %v577_v47 = vmul.f32 %v1276_v30, %v1009_v52 }
  0x60   :  { %v386_v3 = vadd.f32 %v1265_v35, %v385_v19  ;;  %v492_v57 = vsel %vm230_vm0, %v1273_v36, -inf  ;;  %v579_v12 = vmul.f32 %v1276_v30, %v1011_v53  ;;  %v587_v4 = vmul.f32 %v1289_v41, %v1031_v0 }
  0x61   :  { %v271_v58 = vrot.slane %v270_v37, 2  ;;  %v490_v25 = vrot.slane %v489_v50, 1  ;;  %v493_v7 = vmax.f32 %v1259_v43, %v492_v57  ;;  %v581_v44 = vadd.f32 %v577_v47, %v571_v48 }
  0x62   :  { %v764_v8 = vpop.eup %763  ;;  %v387_v20 = vrot.slane %v386_v3, 4  ;;  %v583_v54 = vadd.f32 %v579_v12, %v573_v34  ;;  %v589_v14 = vmul.f32 %v1289_v41, %v1033_v1  ;;  %vm285_vm4 = vcmp.eq.f32.partialorder %v284_v38, 8.507059e+37  ;;  %v1333_v38 = vld [vmem:[%s1549_s1] sm:$0xff] }
  0x63   :  { %v276_v60 = vmul.f32 %v764_v8, %v1252_v32  ;;  %vm281_vm2 = vweird.f32 %v764_v8  ;;  %v272_v52 = vadd.f32 %v271_v58, %v270_v37  ;;  %v491_v18 = vmax.f32 %v489_v50, %v490_v25  ;;  %v1296_v53 = vpop.eup %765  ;;  %v1338_v25 = vld [vmem:[%s1549_s1 + $0x10] sm:$0x1] }
  0x64   :  { %v388_v10 = vadd.f32 %v387_v20, %v386_v3  ;;  %v494_v11 = vrot.slane %v493_v7, 4  ;;  %v1300_v16 = vadd.f32 %v587_v4, %v581_v44  ;;  %v1302_v26 = vpop.eup %767  ;;  %v1308_v31 = vadd.f32 %v589_v14, %v583_v54  ;;  %vm1316_vm3 = vmor %vm280_vm1, %vm281_vm2 }
  0x65   :  { %v277_v17 = vsub.f32 1.0, %v276_v60  ;;  %v273_v0 = vrot.slane %v272_v52, 1  ;;  %v500_v55 = vsub.f32 %v1221_v39, %v491_v18  ;;  %v502_v28 = vsub.f32 %v1224_v45, %v491_v18 }
  0x66   :  { %v389_v5 = vrot.slane %v388_v10, 2  ;;  %v393_v33 = vsel %vm230_vm0, %v1302_v26, 0.0  ;;  %v495_v62 = vmax.f32 %v493_v7, %v494_v11  ;;  %v287_v45 = vor.u32 1.1754944e-38, %v286_v49 }
  0x67   :  { %v278_v48 = vmul.f32 %v764_v8, %v277_v17  ;;  %v1310_v34 = vadd.f32 %v273_v0, %v272_v52  ;;  %v394_v1 = vadd.f32 %v1296_v53, %v393_v33  ;;  %v504_v40 = vmul.f32 1.442695, %v500_v55 }
  0x68   :  { %v390_v42 = vadd.f32 %v389_v5, %v388_v10  ;;  %v508_v24 = vmul.f32 1.442695, %v502_v28  ;;  %v496_v37 = vrot.slane %v495_v62, 2  ;;  %v1328_v12 = vstv %s1294_s26 }
  0x69   :  { %v279_v19 = vadd.f32 %v764_v8, %v278_v48  ;;  %769 = vrcp.f32 %v1310_v34  ;;  %v299_v50 = vand.u32 2147483647, %v1310_v34  ;;  %v301_v3 = vand.u32 2147483648, %v1310_v34 }
  0x6a   :  { %v391_v57 = vrot.slane %v390_v42, 1  ;;  %v395_v47 = vrot.slane %v394_v1, 4  ;;  %771 = vpow2.f32 %v504_v40  ;;  %v497_v49 = vmax.f32 %v495_v62, %v496_v37 }
  0x6b   :  { %v283_v32 = vsel %vm1316_vm3, %v764_v8, %v279_v19  ;;  %773 = vpow2.f32 %v508_v24  ;;  %vm295_vm5 = vweird.f32 %v1310_v34  ;;  %vm1345_vm6 = vcmp.eq.f32.partialorder %v299_v50, 8.507059e+37 }
  0x6c   :  { %v288_v58 = vsel %vm285_vm4, %v287_v45, %v283_v32  ;;  %v1340_v7 = vadd.f32 %v391_v57, %v390_v42  ;;  %v396_v20 = vadd.f32 %v395_v47, %v394_v1  ;;  %v498_v54 = vrot.slane %v497_v49, 1 }
  0x6d   :  { %v289_v8 = vmul.f32 %v1203_v6, %v288_v58  ;;  %v305_v44 = vmul.f32 %v1208_v2, %v288_v58  ;;  %v302_v60 = vor.u32 1.1754944e-38, %v301_v3  ;;  %v597_v18 = vmul.f32 %v1328_v12, %v1055_v21 }
  0x6e   :  { %775 = vrcp.f32 %v1340_v7  ;;  %v410_v52 = vand.u32 2147483647, %v1340_v7  ;;  %v397_v14 = vrot.slane %v396_v20, 2  ;;  %v499_v2 = vmax.f32 %v497_v49, %v498_v54  ;;  %v1411_v54 = vld [vmem:[%s1549_s1 + $0x8] sm:$0xff] }
  0x6f   :  { %v770_v10 = vpop.eup %769  ;;  %v307_v6 = vmul.f32 %v289_v8, %v1333_v38  ;;  %v309_v11 = vmul.f32 %v305_v44, %v1338_v25  ;;  %vm406_vm8 = vweird.f32 %v1340_v7  ;;  %v412_v55 = vand.u32 2147483648, %v1340_v7 }
  0x70   :  { %v1355_v17 = vpop.eup %771  ;;  %v291_v0 = vmul.f32 %v770_v10, %v1310_v34  ;;  %vm296_vm7 = vweird.f32 %v770_v10  ;;  %v398_v21 = vadd.f32 %v397_v14, %v396_v20  ;;  %v501_v5 = vsub.f32 %v1259_v43, %v499_v2 }
  0x71   :  { %v1360_v28 = vpop.eup %773  ;;  %311 = vst [vmem:[%s1554_s6] sm:$0xff] %v307_v6  ;;  %v503_v33 = vsub.f32 %v1273_v36, %v499_v2  ;;  %v599_v62 = vmul.f32 %v1328_v12, %v1057_v22  ;;  %v601_v40 = vadd.f32 %v597_v18, %v1300_v16  ;;  %v1376_v39 = vstv %s1323_s27  ;;  %vm1387_vm10 = vmor %vm295_vm5, %vm296_vm7 }
  0x72   :  { %v292_v48 = vsub.f32 1.0, %v291_v0  ;;  %313 = vst [vmem:[%s1554_s6 + $0x10] sm:$0x1] %v309_v11  ;;  %v512_v1 = vsel %vm230_vm0, %v1360_v28, 0.0  ;;  %vm1378_vm9 = vcmp.eq.f32.partialorder %v410_v52, 8.507059e+37  ;;  %v399_v43 = vrot.slane %v398_v21, 1 }
  0x73   :  { %v513_v36 = vadd.f32 %v1355_v17, %v512_v1  ;;  %v506_v22 = vmul.f32 1.442695, %v501_v5  ;;  %v413_v37 = vor.u32 1.1754944e-38, %v412_v55  ;;  %v510_v19 = vmul.f32 1.442695, %v503_v33 }
  0x74   :  { %v776_v42 = vpop.eup %775  ;;  %v293_v24 = vmul.f32 %v770_v10, %v292_v48  ;;  %v603_v50 = vadd.f32 %v599_v62, %v1308_v31  ;;  %v1392_v57 = vadd.f32 %v399_v43, %v398_v21  ;;  %v1395_v32 = vadd.f32 %v1376_v39, %v601_v40  ;;  %v1418_v52 = vld [vmem:[%s1549_s1 + $0x18] sm:$0x1] }
  0x75   :  { %v402_v3 = vmul.f32 %v776_v42, %v1340_v7  ;;  %v514_v47 = vrot.slane %v513_v36, 4  ;;  %777 = vpow2.f32 %v506_v22  ;;  %v572_v31 = vmul.f32 %v1248_v29, %v1029_v63 }
  0x76   :  { %v294_v49 = vadd.f32 %v770_v10, %v293_v24  ;;  %v1398_v58 = vadd.f32 %v1376_v39, %v603_v50  ;;  %vm407_vm11 = vweird.f32 %v776_v42  ;;  %779 = vrcp.f32 %v1392_v57 }
  0x77   :  { %v403_v34 = vsub.f32 1.0, %v402_v3  ;;  %v574_v20 = vmul.f32 %v1248_v29, %v1059_v23  ;;  %vm421_vm12 = vweird.f32 %v1392_v57  ;;  %v515_v44 = vadd.f32 %v514_v47, %v513_v36  ;;  %vm1428_vm13 = vmor %vm406_vm8, %vm407_vm11 }
  0x78   :  { %v298_v8 = vsel %vm1387_vm10, %v770_v10, %v294_v49  ;;  %781 = vpow2.f32 %v510_v19  ;;  %v425_v29 = vand.u32 2147483647, %v1392_v57  ;;  %v611_v18 = vsel %vm230_vm0, %v1398_v58, -inf }
  0x79   :  { %v303_v63 = vsel %vm1345_vm6, %v302_v60, %v298_v8  ;;  %v404_v23 = vmul.f32 %v776_v42, %v403_v34  ;;  %v427_v60 = vand.u32 2147483648, %v1392_v57  ;;  %v516_v11 = vrot.slane %v515_v44, 2 }
  0x7a   :  { %v304_v10 = vmul.f32 %v1241_v13, %v303_v63  ;;  %v306_v6 = vmul.f32 %v1243_v27, %v303_v63  ;;  %v612_v2 = vmax.f32 %v1395_v32, %v611_v18  ;;  %v578_v0 = vmul.f32 %v1276_v30, %v1098_v56 }
  0x7b   :  { %v405_v14 = vadd.f32 %v776_v42, %v404_v23  ;;  %v580_v13 = vmul.f32 %v1276_v30, %v1107_v59  ;;  %v1438_v27 = vpop.eup %777  ;;  %v517_v21 = vadd.f32 %v516_v11, %v515_v44  ;;  %v588_v5 = vmul.f32 %v1289_v41, %v1114_v9 }
  0x7c   :  { %v308_v7 = vmul.f32 %v304_v10, %v1411_v54  ;;  %v310_v55 = vmul.f32 %v306_v6, %v1418_v52  ;;  %v780_v33 = vpop.eup %779  ;;  %v613_v48 = vrot.slane %v612_v2, 4  ;;  %v582_v1 = vadd.f32 %v578_v0, %v572_v31 }
  0x7d   :  { %v409_v62 = vsel %vm1428_vm13, %v776_v42, %v405_v14  ;;  %v584_v56 = vadd.f32 %v580_v13, %v574_v20  ;;  %v417_v30 = vmul.f32 %v780_v33, %v1392_v57  ;;  %vm422_vm14 = vweird.f32 %v780_v33 }
  0x7e   :  { %v1446_v40 = vpop.eup %781  ;;  %312 = vst [vmem:[%s1554_s6 + $0x8] sm:$0xff] %v308_v7  ;;  %v414_v59 = vsel %vm1378_vm9, %v413_v37, %v409_v62  ;;  %v518_v9 = vrot.slane %v517_v21, 1  ;;  %v614_v42 = vmax.f32 %v612_v2, %v613_v48  ;;  %v590_v37 = vmul.f32 %v1289_v41, %v1116_v46  ;;  %vm1472_vm15 = vmor %vm421_vm12, %vm422_vm14 }
  0x7f   :  { %314 = vst [vmem:[%s1554_s6 + $0x18] sm:$0x1] %v310_v55  ;;  %v415_v43 = vmul.f32 %v1265_v35, %v414_v59  ;;  %v431_v36 = vmul.f32 %v1269_v51, %v414_v59  ;;  %v520_v22 = vsel %vm230_vm0, %v1446_v40, 0.0  ;;  %v418_v24 = vsub.f32 1.0, %v417_v30 }
  0x80   :  { %v519_v19 = vadd.f32 %v518_v9, %v517_v21  ;;  %v521_v45 = vadd.f32 %v1438_v27, %v520_v22  ;;  %v615_v3 = vrot.slane %v614_v42, 2  ;;  %v592_v35 = vadd.f32 %v588_v5, %v582_v1 }
  0x81   :  { %v433_v50 = vmul.f32 %v415_v43, %v1333_v38  ;;  %v435_v16 = vmul.f32 %v431_v36, %v1338_v25  ;;  %v419_v47 = vmul.f32 %v780_v33, %v418_v24  ;;  %v428_v46 = vor.u32 1.1754944e-38, %v427_v60 }
  0x82   :  { %783 = vrcp.f32 %v519_v19  ;;  %v522_v41 = vrot.slane %v521_v45, 4  ;;  %v616_v49 = vmax.f32 %v614_v42, %v615_v3  ;;  %v594_v31 = vadd.f32 %v590_v37, %v584_v56 }
  0x83   :  { %725 = vst [vmem:[%s1554_s6 + $0x20] sm:$0xff] %v433_v50  ;;  %v420_v34 = vadd.f32 %v780_v33, %v419_v47  ;;  %vm426_vm1 = vcmp.eq.f32.partialorder %v425_v29, 8.507059e+37  ;;  %v598_v20 = vmul.f32 %v1328_v12, %v1130_v15  ;;  %v600_v57 = vmul.f32 %v1328_v12, %v1133_v61 }
  0x84   :  { %727 = vst [vmem:[%s1554_s6 + $0x30] sm:$0x1] %v435_v16  ;;  %vm533_vm2 = vweird.f32 %v519_v19  ;;  %v523_v8 = vadd.f32 %v522_v41, %v521_v45  ;;  %v617_v44 = vrot.slane %v616_v49, 1  ;;  %v537_v23 = vand.u32 2147483647, %v519_v19 }
  0x85   :  { %v424_v63 = vsel %vm1472_vm15, %v780_v33, %v420_v34  ;;  %v602_v18 = vadd.f32 %v598_v20, %v592_v35  ;;  %v604_v10 = vadd.f32 %v600_v57, %v594_v31  ;;  %v539_v6 = vand.u32 2147483648, %v519_v19 }
  0x86   :  { %v429_v29 = vsel %vm426_vm1, %v428_v46, %v424_v63  ;;  %v524_v4 = vrot.slane %v523_v8, 2  ;;  %v618_v60 = vmax.f32 %v616_v49, %v617_v44  ;;  %vm538_vm5 = vcmp.eq.f32.partialorder %v537_v23, 8.507059e+37 }
  0x87   :  { %v430_v14 = vmul.f32 %v1296_v53, %v429_v29  ;;  %v432_v15 = vmul.f32 %v1302_v26, %v429_v29  ;;  %v608_v61 = vadd.f32 %v1376_v39, %v602_v18  ;;  %v610_v12 = vadd.f32 %v1376_v39, %v604_v10 }
  0x88   :  { %v784_v11 = vpop.eup %783  ;;  %v525_v0 = vadd.f32 %v524_v4, %v523_v8  ;;  %v627_v13 = vsub.f32 %v1395_v32, %v618_v60  ;;  %v629_v21 = vsub.f32 %v1398_v58, %v618_v60  ;;  %v540_v58 = vor.u32 1.1754944e-38, %v539_v6 }
  0x89   :  { %v529_v2 = vmul.f32 %v784_v11, %v519_v19  ;;  %vm534_vm3 = vweird.f32 %v784_v11  ;;  %v434_v7 = vmul.f32 %v430_v14, %v1411_v54  ;;  %v436_v55 = vmul.f32 %v432_v15, %v1418_v52 }
  0x8a   :  { %v619_v5 = vsel %vm230_vm0, %v610_v12, -inf  ;;  %v526_v33 = vrot.slane %v525_v0, 1  ;;  %v631_v26 = vmul.f32 1.442695, %v627_v13  ;;  %v635_v39 = vmul.f32 1.442695, %v629_v21  ;;  %vm535_vm4 = vmor %vm533_vm2, %vm534_vm3 }
  0x8b   :  { %v530_v53 = vsub.f32 1.0, %v529_v2  ;;  %v620_v62 = vmax.f32 %v608_v61, %v619_v5  ;;  %726 = vst [vmem:[%s1554_s6 + $0x28] sm:$0xff] %v434_v7 }
  0x8c   :  { %728 = vst [vmem:[%s1554_s6 + $0x38] sm:$0x1] %v436_v55  ;;  %v527_v48 = vadd.f32 %v526_v33, %v525_v0  ;;  %785 = vpow2.f32 %v631_v26 }
  0x8d   :  { %v531_v32 = vmul.f32 %v784_v11, %v530_v53  ;;  %v621_v1 = vrot.slane %v620_v62, 4  ;;  %787 = vpow2.f32 %v635_v39 }
  0x8e   :  { %789 = vrcp.f32 %v527_v48  ;;  %vm548_vm6 = vweird.f32 %v527_v48 }
  0x8f   :  { %v532_v56 = vadd.f32 %v784_v11, %v531_v32  ;;  %v622_v59 = vmax.f32 %v620_v62, %v621_v1 }
  0x91   :  { %v536_v30 = vsel %vm535_vm4, %v784_v11, %v532_v56  ;;  %v623_v43 = vrot.slane %v622_v59, 2 }
  0x92   :  { %v541_v9 = vsel %vm538_vm5, %v540_v58, %v536_v30  ;;  %v1502_v36 = vpop.eup %785 }
  0x93   :  { %v542_v22 = vmul.f32 %v1355_v17, %v541_v9  ;;  %v558_v42 = vmul.f32 %v1360_v28, %v541_v9  ;;  %v1506_v24 = vpop.eup %787  ;;  %v624_v45 = vmax.f32 %v622_v59, %v623_v43  ;;  %v552_v17 = vand.u32 2147483647, %v527_v48 }
  0x94   :  { %v790_v19 = vpop.eup %789  ;;  %v639_v16 = vsel %vm230_vm0, %v1506_v24, 0.0  ;;  %v554_v28 = vand.u32 2147483648, %v527_v48 }
  0x95   :  { %v560_v37 = vmul.f32 %v542_v22, %v1333_v38  ;;  %v562_v50 = vmul.f32 %v558_v42, %v1338_v25  ;;  %v544_v3 = vmul.f32 %v790_v19, %v527_v48  ;;  %v640_v47 = vadd.f32 %v1502_v36, %v639_v16 }
  0x96   :  { %v625_v35 = vrot.slane %v624_v45, 1  ;;  %vm549_vm7 = vweird.f32 %v790_v19  ;;  %vm553_vm9 = vcmp.eq.f32.partialorder %v552_v17, 8.507059e+37  ;;  %v555_v57 = vor.u32 1.1754944e-38, %v554_v28 }
  0x97   :  { %734 = vst [vmem:[%s1554_s6 + $0x40] sm:$0xff] %v560_v37  ;;  %v545_v51 = vsub.f32 1.0, %v544_v3  ;;  %v641_v46 = vrot.slane %v640_v47, 4  ;;  %vm550_vm8 = vmor %vm548_vm6, %vm549_vm7 }
  0x98   :  { %736 = vst [vmem:[%s1554_s6 + $0x50] sm:$0x1] %v562_v50  ;;  %v626_v41 = vmax.f32 %v624_v45, %v625_v35 }
  0x99   :  { %v546_v49 = vmul.f32 %v790_v19, %v545_v51  ;;  %v642_v31 = vadd.f32 %v641_v46, %v640_v47 }
  0x9a   :  { %v628_v34 = vsub.f32 %v608_v61, %v626_v41  ;;  %v630_v20 = vsub.f32 %v610_v12, %v626_v41 }
  0x9b   :  { %v547_v8 = vadd.f32 %v790_v19, %v546_v49  ;;  %v643_v44 = vrot.slane %v642_v31, 2 }
  0x9c   :  { %v633_v63 = vmul.f32 1.442695, %v628_v34  ;;  %v637_v23 = vmul.f32 1.442695, %v630_v20 }
  0x9d   :  { %v551_v18 = vsel %vm550_vm8, %v790_v19, %v547_v8  ;;  %v644_v10 = vadd.f32 %v643_v44, %v642_v31 }
  0x9e   :  { %791 = vpow2.f32 %v633_v63  ;;  %v556_v29 = vsel %vm553_vm9, %v555_v57, %v551_v18 }
  0x9f   :  { %793 = vpow2.f32 %v637_v23  ;;  %v557_v6 = vmul.f32 %v1438_v27, %v556_v29  ;;  %v559_v4 = vmul.f32 %v1446_v40, %v556_v29  ;;  %v645_v60 = vrot.slane %v644_v10, 1 }
  0xa1   :  { %v561_v11 = vmul.f32 %v557_v6, %v1411_v54  ;;  %v563_v14 = vmul.f32 %v559_v4, %v1418_v52  ;;  %v646_v15 = vadd.f32 %v645_v60, %v644_v10 }
  0xa3   :  { %735 = vst [vmem:[%s1554_s6 + $0x48] sm:$0xff] %v561_v11  ;;  %795 = vrcp.f32 %v646_v15  ;;  %vm660_vm10 = vweird.f32 %v646_v15  ;;  %v666_v55 = vand.u32 2147483648, %v646_v15  ;;  %v664_v5 = vand.u32 2147483647, %v646_v15 }
  0xa4   :  { %v792_v61 = vpop.eup %791  ;;  %737 = vst [vmem:[%s1554_s6 + $0x58] sm:$0x1] %v563_v14 }
  0xa5   :  { %v794_v12 = vpop.eup %793  ;;  %v667_v62 = vor.u32 1.1754944e-38, %v666_v55  ;;  %vm665_vm13 = vcmp.eq.f32.partialorder %v664_v5, 8.507059e+37 }
  0xa6   :  { %v647_v27 = vsel %vm230_vm0, %v794_v12, 0.0 }
  0xa7   :  { %v648_v40 = vadd.f32 %v792_v61, %v647_v27 }
  0xa9   :  { %v649_v2 = vrot.slane %v648_v40, 4  ;;  %v796_v0 = vpop.eup %795 }
  0xaa   :  { %v656_v13 = vmul.f32 %v796_v0, %v646_v15  ;;  %vm661_vm11 = vweird.f32 %v796_v0 }
  0xab   :  { %v650_v7 = vadd.f32 %v649_v2, %v648_v40  ;;  %vm662_vm12 = vmor %vm660_vm10, %vm661_vm11 }
  0xac   :  { %v657_v21 = vsub.f32 1.0, %v656_v13 }
  0xad   :  { %v651_v53 = vrot.slane %v650_v7, 2 }
  0xae   :  { %v658_v33 = vmul.f32 %v796_v0, %v657_v21 }
  0xaf   :  { %v652_v26 = vadd.f32 %v651_v53, %v650_v7 }
  0xb0   :  { %v659_v39 = vadd.f32 %v796_v0, %v658_v33 }
  0xb1   :  { %v653_v32 = vrot.slane %v652_v26, 1 }
  0xb2   :  { %v663_v48 = vsel %vm662_vm12, %v796_v0, %v659_v39 }
  0xb3   :  { %v654_v1 = vadd.f32 %v653_v32, %v652_v26  ;;  %v668_v58 = vsel %vm665_vm13, %v667_v62, %v663_v48 }
  0xb4   :  { %v669_v56 = vmul.f32 %v1502_v36, %v668_v58  ;;  %v685_v59 = vmul.f32 %v1506_v24, %v668_v58 }
  0xb5   :  { %797 = vrcp.f32 %v654_v1  ;;  %v681_v42 = vand.u32 2147483648, %v654_v1  ;;  %vm675_vm0 = vweird.f32 %v654_v1  ;;  %v679_v36 = vand.u32 2147483647, %v654_v1 }
  0xb6   :  { %v687_v30 = vmul.f32 %v669_v56, %v1333_v38  ;;  %v689_v9 = vmul.f32 %v685_v59, %v1338_v25 }
  0xb7   :  { %v682_v38 = vor.u32 1.1754944e-38, %v681_v42  ;;  %vm680_vm1 = vcmp.eq.f32.partialorder %v679_v36, 8.507059e+37 }
  0xb8   :  { %743 = vst [vmem:[%s1554_s6 + $0x60] sm:$0xff] %v687_v30 }
  0xb9   :  { %745 = vst [vmem:[%s1554_s6 + $0x70] sm:$0x1] %v689_v9 }
  0xbb   :  { %v798_v43 = vpop.eup %797 }
  0xbc   :  { %v671_v22 = vmul.f32 %v798_v43, %v654_v1  ;;  %vm676_vm14 = vweird.f32 %v798_v43 }
  0xbd   :  { %vm677_vm15 = vmor %vm675_vm0, %vm676_vm14 }
  0xbe   :  { %v672_v45 = vsub.f32 1.0, %v671_v22 }
  0xc0   :  { %v673_v24 = vmul.f32 %v798_v43, %v672_v45 }
  0xc2   :  { %v674_v19 = vadd.f32 %v798_v43, %v673_v24 }
  0xc4   :  { %v678_v25 = vsel %vm677_vm15, %v798_v43, %v674_v19 }
  0xc5   :  { %v683_v37 = vsel %vm680_vm1, %v682_v38, %v678_v25 }
  0xc6   :  { %v684_v50 = vmul.f32 %v792_v61, %v683_v37  ;;  %v686_v16 = vmul.f32 %v794_v12, %v683_v37 }
  0xc8   :  { %v688_v3 = vmul.f32 %v684_v50, %v1411_v54  ;;  %v690_v47 = vmul.f32 %v686_v16, %v1418_v52 }
  0xca   :  { %744 = vst [vmem:[%s1554_s6 + $0x68] sm:$0xff] %v688_v3 }
  0xcb   :  { %746 = vst [vmem:[%s1554_s6 + $0x78] sm:$0x1] %v690_v47 }
  0xcc   :  { %700 = vsyncpa [#allocation3], 1 }
  0xcd   :  { %701 = vsyncpa [#allocation5], 1 }
  0xce   :  { %702 = vsyncpa [#allocation8], 1 }

</bundles_post_ra>
